<compile_context>
chip_gen: v5e
topology: v5e:2x2
jax: 0.10.0
libtpu: 0.0.40
codegen_flags: <defaults>
</compile_context>

<pallas_src>
import jax
import jax.numpy as jnp
from jax.experimental import pallas as pl
from jax.experimental.pallas import tpu as pltpu


def _round_up(x, m):
    return (x + m - 1) // m * m


def swiglu_kernel(x_ref, wg_ref, bg_ref, wv_ref, bv_ref, wo_ref, bo_ref,
                  o_ref, acc_ref):
    # Shapes (per grid step (i, k)):
    #   x_ref:  (tm, d_pad)        wg_ref/wv_ref: (d_pad, th)
    #   bg_ref/bv_ref: (1, th)     wo_ref: (th, d_pad)
    #   bo_ref: (1, d_pad)         o_ref:  (tm, d_pad)
    #   acc_ref (scratch, f32): (tm, d_pad), resident across the k axis.
    k = pl.program_id(1)

    @pl.when(k == 0)
    def _():
        acc_ref[...] = jnp.zeros_like(acc_ref)

    # Gate / value projections (MXU, f32 accumulation) + f32 bias.
    gate = jnp.dot(x_ref[...], wg_ref[...],
                   preferred_element_type=jnp.float32) + bg_ref[...]
    val = jnp.dot(x_ref[...], wv_ref[...],
                  preferred_element_type=jnp.float32) + bv_ref[...]

    # SiLU(gate) * val in f32 (VPU + EUP).
    y = gate * jax.nn.sigmoid(gate) * val

    # Output projection: accumulate over the hidden-dim (k) grid axis.
    acc_ref[...] += jnp.dot(y.astype(wo_ref.dtype), wo_ref[...],
                            preferred_element_type=jnp.float32)

    @pl.when(k == pl.num_programs(1) - 1)
    def _():
        o_ref[...] = (acc_ref[...] + bo_ref[...]).astype(o_ref.dtype)


def swiglu(x, w_in, b_in, w_out, b_out, *, tm=256, th=512,
           compute_dtype=jnp.bfloat16):
    """x: (batch, seq, d_model). Weights in PyTorch Linear convention:
    w_in: (2h, d_model), b_in: (2h,), w_out: (d_model, h), b_out: (d_model,).

    tm: row tile (multiple of 128 recommended; 256+ on v6e/v7x).
    th: hidden-dim tile (multiple of 128; reduction grid axis for the output
        projection, keeps weight tiles small enough for v7x's 64 MiB VMEM).
    """
    batch, seq, d_model = x.shape
    two_h = w_in.shape[0]
    h = two_h // 2
    M = batch * seq
    f32 = jnp.float32

    # Clamp tiles to the (128-padded) problem size, keep them 128-aligned.
    tm = min(tm, _round_up(M, 128))
    th = min(th, _round_up(h, 128))

    M_pad = _round_up(M, tm)
    h_pad = _round_up(h, th)
    d_pad = _round_up(d_model, 128)

    # Split the fused in-projection into gate / value halves (== chunk(2, -1)
    # of the output): rows [:h] produce the gate, rows [h:] the value.
    w_gate, w_val = w_in[:h], w_in[h:]
    b_gate, b_val = b_in[:h], b_in[h:]

    # Zero-pad everything to lane/sublane-friendly shapes; zero padding is
    # numerically inert (zero weights/bias columns -> silu(0)*0 == 0).
    x2d = jnp.zeros((M_pad, d_pad), compute_dtype).at[:M, :d_model].set(
        x.reshape(M, d_model).astype(compute_dtype))
    wg_t = jnp.zeros((d_pad, h_pad), compute_dtype).at[:d_model, :h].set(
        w_gate.T.astype(compute_dtype))
    wv_t = jnp.zeros((d_pad, h_pad), compute_dtype).at[:d_model, :h].set(
        w_val.T.astype(compute_dtype))
    wo_t = jnp.zeros((h_pad, d_pad), compute_dtype).at[:h, :d_model].set(
        w_out.T.astype(compute_dtype))
    bg = jnp.zeros((1, h_pad), f32).at[:, :h].set(b_gate.astype(f32)[None])
    bv = jnp.zeros((1, h_pad), f32).at[:, :h].set(b_val.astype(f32)[None])
    bo = jnp.zeros((1, d_pad), f32).at[:, :d_model].set(
        b_out.astype(f32)[None])

    grid = (M_pad // tm, h_pad // th)  # (parallel rows, hidden-dim reduction)

    out2d = pl.pallas_call(
        swiglu_kernel,
        out_shape=jax.ShapeDtypeStruct((M_pad, d_pad), x.dtype),
        grid=grid,
        in_specs=[
            pl.BlockSpec((tm, d_pad), lambda i, k: (i, 0)),   # x rows
            pl.BlockSpec((d_pad, th), lambda i, k: (0, k)),   # W_gate tile
            pl.BlockSpec((1, th), lambda i, k: (0, k)),       # b_gate tile
            pl.BlockSpec((d_pad, th), lambda i, k: (0, k)),   # W_val tile
            pl.BlockSpec((1, th), lambda i, k: (0, k)),       # b_val tile
            pl.BlockSpec((th, d_pad), lambda i, k: (k, 0)),   # W_out tile
            pl.BlockSpec((1, d_pad), lambda i, k: (0, 0)),    # b_out
        ],
        out_specs=pl.BlockSpec((tm, d_pad), lambda i, k: (i, 0)),
        scratch_shapes=[pltpu.VMEM((tm, d_pad), jnp.float32)],
        compiler_params=pltpu.CompilerParams(
            dimension_semantics=("parallel", "arbitrary"),
            vmem_limit_bytes=64 * 1024 * 1024),
    )(x2d, wg_t, bg, wv_t, bv, wo_t, bo)

    return out2d[:M, :d_model].reshape(batch, seq, d_model)


def _init_linear(key, out_features, in_features, dtype=jnp.float32):
    # Deterministic init mimicking nn.Linear: U(-1/sqrt(fan_in), 1/sqrt(fan_in)).
    kw, kb = jax.random.split(key)
    bound = 1.0 / (in_features ** 0.5)
    w = jax.random.uniform(kw, (out_features, in_features), dtype,
                           minval=-bound, maxval=bound)
    b = jax.random.uniform(kb, (out_features,), dtype,
                           minval=-bound, maxval=bound)
    return w, b


def _reference(x, w_in, b_in, w_out, b_out):
    z = jnp.einsum("bsd,od->bso", x, w_in) + b_in
    h = w_in.shape[0] // 2
    gate, val = z[..., :h], z[..., h:]
    y = gate * jax.nn.sigmoid(gate) * val
    return jnp.einsum("bsh,oh->bso", y, w_out) + b_out


if __name__ == "__main__":
    d_model = 48                       # -> h = d_model * 4 // 3 = 64, 2h = 128
    h = d_model * 4 // 3
    batch, seq = 2, 8

    key = jax.random.PRNGKey(0)
    kx, k_in, k_out = jax.random.split(key, 3)

    x = jax.random.normal(kx, (batch, seq, d_model), jnp.float32)
    w_in, b_in = _init_linear(k_in, 2 * h, d_model)
    w_out, b_out = _init_linear(k_out, d_model, h)

    ref = _reference(x, w_in, b_in, w_out, b_out)

    # f32 compute path: exact-semantics check (tight tolerance).
    out_f32 = swiglu(x, w_in, b_in, w_out, b_out, compute_dtype=jnp.float32)
    out_f32 = jax.block_until_ready(out_f32)
    assert out_f32.shape == (batch, seq, d_model)
    assert jnp.allclose(out_f32, ref, atol=1e-4, rtol=1e-4), \
        "f32 path mismatch vs reference"

    # Default (bf16 weights/activations, f32 accumulation) fast path.
    out = swiglu(x, w_in, b_in, w_out, b_out)
    out = jax.block_until_ready(out)
    assert out.shape == (batch, seq, d_model)
    assert jnp.allclose(out, ref, atol=3e-2, rtol=3e-2), \
        "bf16 path mismatch vs reference"

    print("KERNEL_OK")
</pallas_src>

<mosaic_0001>
module attributes {stable_mosaic.version = 11 : i64} {
  func.func @swiglu_kernel(%arg0: i32, %arg1: i32, %arg2: memref<128x128xf32, #tpu.memory_space<vmem>>, %arg3: memref<128x128xf32, #tpu.memory_space<vmem>>, %arg4: memref<1x128xf32, #tpu.memory_space<vmem>>, %arg5: memref<128x128xf32, #tpu.memory_space<vmem>>, %arg6: memref<1x128xf32, #tpu.memory_space<vmem>>, %arg7: memref<128x128xf32, #tpu.memory_space<vmem>>, %arg8: memref<1x128xf32, #tpu.memory_space<vmem>>, %arg9: memref<128x128xf32, #tpu.memory_space<vmem>>, %arg10: memref<128x128xf32, #tpu.memory_space<vmem>>) attributes {dimension_semantics = [#tpu.dimension_semantics<parallel>, #tpu.dimension_semantics<arbitrary>], iteration_bounds = array<i64: 1, 1>, scalar_prefetch = 0 : i64, scratch_operands = 1 : i64, tpu.core_type = #tpu.core_type<tc>, window_params = [{transform_indices = @transform_0, window_bounds = array<i64: 128, 128>}, {transform_indices = @transform_1, window_bounds = array<i64: 128, 128>}, {transform_indices = @transform_2, window_bounds = array<i64: 1, 128>}, {transform_indices = @transform_3, window_bounds = array<i64: 128, 128>}, {transform_indices = @transform_4, window_bounds = array<i64: 1, 128>}, {transform_indices = @transform_5, window_bounds = array<i64: 128, 128>}, {pipeline_mode = #tpu.pipeline_mode<synchronous>, transform_indices = @transform_6, window_bounds = array<i64: 1, 128>}, {transform_indices = @transform_7, window_bounds = array<i64: 128, 128>}]} {
    %c0_i32 = arith.constant 0 : i32
    %0 = arith.cmpi eq, %arg1, %c0_i32 : i32
    %1 = arith.extui %0 : i1 to i32
    %c0_i32_0 = arith.constant 0 : i32
    %2 = arith.cmpi ne, %1, %c0_i32_0 : i32
    scf.if %2 {
      %cst_23 = arith.constant 0.000000e+00 : f32
      %30 = vector.broadcast %cst_23 : f32 to vector<128x128xf32>
      %c0_24 = arith.constant 0 : index
      %c0_25 = arith.constant 0 : index
      %31 = vector.load %arg10[%c0_24, %c0_25] : memref<128x128xf32, #tpu.memory_space<vmem>>, vector<128x128xf32>
      tpu.vector_store %arg10[%c0_24, %c0_25], %30 {strides = array<i32>} : memref<128x128xf32, #tpu.memory_space<vmem>>, vector<128x128xf32>,
    } else {
    }
    %c0 = arith.constant 0 : index
    %c0_1 = arith.constant 0 : index
    %3 = vector.load %arg2[%c0, %c0_1] : memref<128x128xf32, #tpu.memory_space<vmem>>, vector<128x128xf32>
    %c0_2 = arith.constant 0 : index
    %c0_3 = arith.constant 0 : index
    %4 = vector.load %arg3[%c0_2, %c0_3] : memref<128x128xf32, #tpu.memory_space<vmem>>, vector<128x128xf32>
    %cst = arith.constant dense<0.000000e+00> : vector<128x128xf32>
    %5 = tpu.matmul %3, %4, %cst {dimension_numbers = #tpu.dot_dimension_numbers<[1], [0], [0], [1], [0, 0, 1, 1], [], []>} : vector<128x128xf32>, vector<128x128xf32>, vector<128x128xf32> -> vector<128x128xf32>
    %c0_4 = arith.constant 0 : index
    %c0_5 = arith.constant 0 : index
    %6 = vector.load %arg4[%c0_4, %c0_5] : memref<1x128xf32, #tpu.memory_space<vmem>>, vector<1x128xf32>
    %7 = vector.broadcast %6 : vector<1x128xf32> to vector<128x128xf32>
    %8 = arith.addf %5, %7 : vector<128x128xf32>
    %c0_6 = arith.constant 0 : index
    %c0_7 = arith.constant 0 : index
    %9 = vector.load %arg2[%c0_6, %c0_7] : memref<128x128xf32, #tpu.memory_space<vmem>>, vector<128x128xf32>
    %c0_8 = arith.constant 0 : index
    %c0_9 = arith.constant 0 : index
    %10 = vector.load %arg5[%c0_8, %c0_9] : memref<128x128xf32, #tpu.memory_space<vmem>>, vector<128x128xf32>
    %cst_10 = arith.constant dense<0.000000e+00> : vector<128x128xf32>
    %11 = tpu.matmul %9, %10, %cst_10 {dimension_numbers = #tpu.dot_dimension_numbers<[1], [0], [0], [1], [0, 0, 1, 1], [], []>} : vector<128x128xf32>, vector<128x128xf32>, vector<128x128xf32> -> vector<128x128xf32>
    %c0_11 = arith.constant 0 : index
    %c0_12 = arith.constant 0 : index
    %12 = vector.load %arg6[%c0_11, %c0_12] : memref<1x128xf32, #tpu.memory_space<vmem>>, vector<1x128xf32>
    %13 = vector.broadcast %12 : vector<1x128xf32> to vector<128x128xf32>
    %14 = arith.addf %11, %13 : vector<128x128xf32>
    %15 = arith.negf %8 : vector<128x128xf32>
    %16 = math.exp %15 : vector<128x128xf32>
    %cst_13 = arith.constant 1.000000e+00 : f32
    %17 = vector.broadcast %cst_13 : f32 to vector<128x128xf32>
    %18 = arith.addf %17, %16 : vector<128x128xf32>
    %19 = arith.divf %17, %18 : vector<128x128xf32>
    %20 = arith.mulf %8, %19 : vector<128x128xf32>
    %21 = arith.mulf %20, %14 : vector<128x128xf32>
    %c0_14 = arith.constant 0 : index
    %c0_15 = arith.constant 0 : index
    %22 = vector.load %arg10[%c0_14, %c0_15] : memref<128x128xf32, #tpu.memory_space<vmem>>, vector<128x128xf32>
    %c0_16 = arith.constant 0 : index
    %c0_17 = arith.constant 0 : index
    %23 = vector.load %arg7[%c0_16, %c0_17] : memref<128x128xf32, #tpu.memory_space<vmem>>, vector<128x128xf32>
    %cst_18 = arith.constant dense<0.000000e+00> : vector<128x128xf32>
    %24 = tpu.matmul %21, %23, %cst_18 {dimension_numbers = #tpu.dot_dimension_numbers<[1], [0], [0], [1], [0, 0, 1, 1], [], []>} : vector<128x128xf32>, vector<128x128xf32>, vector<128x128xf32> -> vector<128x128xf32>
    %25 = arith.addf %22, %24 : vector<128x128xf32>
    %c0_19 = arith.constant 0 : index
    %c0_20 = arith.constant 0 : index
    %26 = vector.load %arg10[%c0_19, %c0_20] : memref<128x128xf32, #tpu.memory_space<vmem>>, vector<128x128xf32>
    tpu.vector_store %arg10[%c0_19, %c0_20], %25 {strides = array<i32>} : memref<128x128xf32, #tpu.memory_space<vmem>>, vector<128x128xf32>,
    %c0_i32_21 = arith.constant 0 : i32
    %27 = arith.cmpi eq, %arg1, %c0_i32_21 : i32
    %28 = arith.extui %27 : i1 to i32
    %c0_i32_22 = arith.constant 0 : i32
    %29 = arith.cmpi ne, %28, %c0_i32_22 : i32
    scf.if %29 {
      %c0_23 = arith.constant 0 : index
      %c0_24 = arith.constant 0 : index
      %30 = vector.load %arg10[%c0_23, %c0_24] : memref<128x128xf32, #tpu.memory_space<vmem>>, vector<128x128xf32>
      %c0_25 = arith.constant 0 : index
      %c0_26 = arith.constant 0 : index
      %31 = vector.load %arg8[%c0_25, %c0_26] : memref<1x128xf32, #tpu.memory_space<vmem>>, vector<1x128xf32>
      %32 = vector.broadcast %31 : vector<1x128xf32> to vector<128x128xf32>
      %33 = arith.addf %30, %32 : vector<128x128xf32>
      %c0_27 = arith.constant 0 : index
      %c0_28 = arith.constant 0 : index
      %34 = vector.load %arg9[%c0_27, %c0_28] : memref<128x128xf32, #tpu.memory_space<vmem>>, vector<128x128xf32>
      tpu.vector_store %arg9[%c0_27, %c0_28], %33 {strides = array<i32>} : memref<128x128xf32, #tpu.memory_space<vmem>>, vector<128x128xf32>,
    } else {
    }
    return
  }
  func.func @transform_0(%arg0: i32, %arg1: i32) -> (i32, i32) {
    %c0_i32 = arith.constant 0 : i32
    %c0_i32_0 = arith.constant 0 : i32
    return %arg0, %c0_i32 : i32, i32
  }
  func.func @transform_1(%arg0: i32, %arg1: i32) -> (i32, i32) {
    %c0_i32 = arith.constant 0 : i32
    %c0_i32_0 = arith.constant 0 : i32
    return %c0_i32, %arg1 : i32, i32
  }
  func.func @transform_2(%arg0: i32, %arg1: i32) -> (i32, i32) {
    %c0_i32 = arith.constant 0 : i32
    %c0_i32_0 = arith.constant 0 : i32
    return %c0_i32, %arg1 : i32, i32
  }
  func.func @transform_3(%arg0: i32, %arg1: i32) -> (i32, i32) {
    %c0_i32 = arith.constant 0 : i32
    %c0_i32_0 = arith.constant 0 : i32
    return %c0_i32, %arg1 : i32, i32
  }
  func.func @transform_4(%arg0: i32, %arg1: i32) -> (i32, i32) {
    %c0_i32 = arith.constant 0 : i32
    %c0_i32_0 = arith.constant 0 : i32
    return %c0_i32, %arg1 : i32, i32
  }
  func.func @transform_5(%arg0: i32, %arg1: i32) -> (i32, i32) {
    %c0_i32 = arith.constant 0 : i32
    %c0_i32_0 = arith.constant 0 : i32
    return %arg1, %c0_i32 : i32, i32
  }
  func.func @transform_6(%arg0: i32, %arg1: i32) -> (i32, i32) {
    %c0_i32 = arith.constant 0 : i32
    %c0_i32_0 = arith.constant 0 : i32
    %c0_i32_1 = arith.constant 0 : i32
    return %c0_i32, %c0_i32_0 : i32, i32
  }
  func.func @transform_7(%arg0: i32, %arg1: i32) -> (i32, i32) {
    %c0_i32 = arith.constant 0 : i32
    %c0_i32_0 = arith.constant 0 : i32
    return %arg0, %c0_i32 : i32, i32
  }
}

</mosaic_0001>

<bundles_post_ra>
// kernel: tpu_custom_call.1
= control target key start
LH: loop header
LB: loop body
LE: loop exit
PB: predicated region body
PF: predicated region fallthrough
CT: control target
= control target key end

     0   :  { %12 = vsyncpa [#allocation4], 0  ;;  %s1500_s0 = inlined_call_operand.hbm [shape: f32[128,128], index: 0, kind: input, shape index: {}]   ;;  %s1501_s1 = inlined_call_operand.hbm [shape: f32[128,128], index: 1, kind: input, shape index: {}]   ;;  %s1502_s2 = inlined_call_operand.vmem [shape: f32[1,128], index: 2, kind: input, shape index: {}]   ;;  %s1503_s3 = inlined_call_operand.hbm [shape: f32[128,128], index: 3, kind: input, shape index: {}]   ;;  %s1504_s4 = inlined_call_operand.vmem [shape: f32[1,128], index: 4, kind: input, shape index: {}]   ;;  %s1505_s5 = inlined_call_operand.hbm [shape: f32[128,128], index: 5, kind: input, shape index: {}]   ;;  %s1506_s6 = inlined_call_operand.vmem [shape: f32[1,128], index: 6, kind: input, shape index: {}]   ;;  %s1507_s7 = inlined_call_operand.hbm [shape: f32[128,128], index: 7, kind: output, shape index: {}]  }
   0x1   :  { %13 = vsyncpa [#allocation7], 0 }
   0x2   :  { %14 = vsyncpa [#allocation10], 0 }
   0x3   :  { %15 = vsyncpa [#allocation5], 0  ;;  %s33_s26 = sshll.u32 %s1501_s1, 4  ;;  %s1103_s27 = smov [#allocation6]   ;;  %s34_s26 = int_to_ptr.hbm [resolvable:$true] %s33_s26 }
   0x4   :  { %s35_s28 = sshll.u32 %s1103_s27, 4  ;;  %s20_s8 = sshll.u32 %s1500_s0, 4  ;;  %s36_s28 = int_to_ptr.vmem [resolvable:$true] %s35_s28  ;;  %s21_s8 = int_to_ptr.hbm [resolvable:$true] %s20_s8 }
   0x5   :  { %s1104_s9 = smov 128   ;;  %s1105_s10 = smov 8  }
   0x6   :  { %41 = dma.hbm_to_vmem [thread:$0]  %s34_s26, 2048, %s36_s28, [#allocation7], %s1104_s9, %s1104_s9, %s1105_s10  }
   0x7   :  { %s1106_s11 = smov [#allocation3]   ;;  %s48_s1 = sshll.u32 %s1503_s3, 4  ;;  %s49_s1 = int_to_ptr.hbm [resolvable:$true] %s48_s1 }
   0x8   :  { %s22_s12 = sshll.u32 %s1106_s11, 4  ;;  %s63_s16 = sshll.u32 %s1505_s5, 4  ;;  %s23_s12 = int_to_ptr.vmem [resolvable:$true] %s22_s12  ;;  %s64_s16 = int_to_ptr.hbm [resolvable:$true] %s63_s16 }
   0x9   :  { %28 = dma.hbm_to_vmem [thread:$0]  %s21_s8, 2048, %s23_s12, [#allocation4], %s1104_s9, %s1104_s9, %s1105_s10  }
   0xa   :  { %s1107_s17 = smov [#allocation8]   ;;  %s1108_s19 = smov [#allocation9]  }
   0xb   :  { %s50_s18 = sshll.u32 %s1107_s17, 4  ;;  %s65_s3 = sshll.u32 %s1108_s19, 4  ;;  %s51_s18 = int_to_ptr.vmem [resolvable:$true] %s50_s18  ;;  %s66_s3 = int_to_ptr.vmem [resolvable:$true] %s65_s3 }
   0xc   :  { %56 = dma.hbm_to_vmem [thread:$0]  %s49_s1, 2048, %s51_s18, [#allocation7], %s1104_s9, %s1104_s9, %s1105_s10  }
   0xd   :  { %71 = dma.hbm_to_vmem [thread:$0]  %s64_s16, 2048, %s66_s3, [#allocation10], %s1104_s9, %s1104_s9, %s1105_s10  }
   0xe   :  { %1095 = dma.done.wait [#allocation4], 2048  }
   0xf   :  { %1096 = vsyncadd [#allocation4], 4294965248 }
  0x10   :  { %1097 = dma.done.wait [#allocation7], 4096  }
  0x11   :  { %1098 = vsyncadd [#allocation7], 4294963200 }
  0x12   :  { %1099 = dma.done.wait [#allocation10], 2048  }
  0x13   :  { %1100 = vsyncadd [#allocation10], 4294965248  ;;  %v141_v0 = vld [vmem:[#allocation6 + $0x78] sm:$0xff]  ;;  %v140_v1 = vld [vmem:[#allocation6 + $0x70] sm:$0xff]  ;;  %s822_s26 = sshll.u32 %s1507_s7, 4  ;;  %s823_s26 = int_to_ptr.hbm [resolvable:$true] %s822_s26 }
  0x14   :  { %146 = vmatpush.msra.mxu0 %v141_v0  ;;  %853 = vmatpush.msra.mxu3 %v141_v0  ;;  %v139_v2 = vld [vmem:[#allocation6 + $0x68] sm:$0xff]  ;;  %v138_v3 = vld [vmem:[#allocation6 + $0x60] sm:$0xff]  ;;  %v1174_v4 = vld [vmem:[#allocation8 + $0x78] sm:$0xff] }
  0x15   :  { %v137_v5 = vld [vmem:[#allocation6 + $0x58] sm:$0xff]  ;;  %231 = vmatpush.msra.mxu1 %v1174_v4  ;;  %v1177_v6 = vld [vmem:[#allocation8 + $0x70] sm:$0xff]  ;;  %v1179_v7 = vld [vmem:[#allocation8 + $0x68] sm:$0xff] }
  0x16   :  { %147 = vmatpush.msra.mxu0 %v140_v1  ;;  %854 = vmatpush.msra.mxu3 %v140_v1  ;;  %v136_v8 = vld [vmem:[#allocation6 + $0x50] sm:$0xff]  ;;  %v1182_v9 = vld [vmem:[#allocation8 + $0x60] sm:$0xff]  ;;  %v135_v10 = vld [vmem:[#allocation6 + $0x48] sm:$0xff] }
  0x17   :  { %232 = vmatpush.msra.mxu1 %v1177_v6  ;;  %v1185_v11 = vld [vmem:[#allocation8 + $0x58] sm:$0xff]  ;;  %v134_v12 = vld [vmem:[#allocation6 + $0x40] sm:$0xff]  ;;  %v221_v13 = vld [vmem:[#allocation8 + $0x50] sm:$0xff] }
  0x18   :  { %148 = vmatpush.msra.mxu0 %v139_v2  ;;  %855 = vmatpush.msra.mxu3 %v139_v2  ;;  %v133_v14 = vld [vmem:[#allocation6 + $0x38] sm:$0xff]  ;;  %v220_v15 = vld [vmem:[#allocation8 + $0x48] sm:$0xff]  ;;  %v132_v16 = vld [vmem:[#allocation6 + $0x30] sm:$0xff] }
  0x19   :  { %233 = vmatpush.msra.mxu1 %v1179_v7  ;;  %v219_v17 = vld [vmem:[#allocation8 + $0x40] sm:$0xff]  ;;  %v131_v18 = vld [vmem:[#allocation6 + $0x28] sm:$0xff]  ;;  %v218_v19 = vld [vmem:[#allocation8 + $0x38] sm:$0xff] }
  0x1a   :  { %149 = vmatpush.msra.mxu0 %v138_v3  ;;  %856 = vmatpush.msra.mxu3 %v138_v3  ;;  %v130_v20 = vld [vmem:[#allocation6 + $0x20] sm:$0xff]  ;;  %v217_v21 = vld [vmem:[#allocation8 + $0x30] sm:$0xff]  ;;  %v129_v22 = vld [vmem:[#allocation6 + $0x18] sm:$0xff] }
  0x1b   :  { %234 = vmatpush.msra.mxu1 %v1182_v9  ;;  %v216_v23 = vld [vmem:[#allocation8 + $0x28] sm:$0xff]  ;;  %v128_v24 = vld [vmem:[#allocation6 + $0x10] sm:$0xff]  ;;  %v215_v25 = vld [vmem:[#allocation8 + $0x20] sm:$0xff] }
  0x1c   :  { %150 = vmatpush.msra.mxu0 %v137_v5  ;;  %857 = vmatpush.msra.mxu3 %v137_v5  ;;  %v127_v26 = vld [vmem:[#allocation6 + $0x8] sm:$0xff]  ;;  %v214_v27 = vld [vmem:[#allocation8 + $0x18] sm:$0xff]  ;;  %v126_v28 = vld [vmem:[#allocation6] sm:$0xff] }
  0x1d   :  { %235 = vmatpush.msra.mxu1 %v1185_v11  ;;  %v110_v29 = vld [vmem:[#allocation3] sm:$0xff]  ;;  %v213_v30 = vld [vmem:[#allocation8 + $0x10] sm:$0xff]  ;;  %v212_v32 = vld [vmem:[#allocation8 + $0x8] sm:$0xff] }
  0x1e   :  { %151 = vmatpush.msra.mxu0 %v136_v8  ;;  %858 = vmatpush.msra.mxu3 %v136_v8  ;;  %v122_v31 = vld [vmem:[#allocation3 + $0x60] sm:$0xff]  ;;  %v111_v34 = vld [vmem:[#allocation3 + $0x8] sm:$0xff]  ;;  %v112_v36 = vld [vmem:[#allocation3 + $0x10] sm:$0xff] }
  0x1f   :  { %236 = vmatpush.msra.mxu1 %v221_v13  ;;  %v211_v33 = vld [vmem:[#allocation8] sm:$0xff]  ;;  %v123_v35 = vld [vmem:[#allocation3 + $0x68] sm:$0xff]  ;;  %v124_v37 = vld [vmem:[#allocation3 + $0x70] sm:$0xff] }
  0x20   :  { %152 = vmatpush.msra.mxu0 %v135_v10  ;;  %859 = vmatpush.msra.mxu3 %v135_v10  ;;  %v113_v38 = vld [vmem:[#allocation3 + $0x18] sm:$0xff]  ;;  %v114_v40 = vld [vmem:[#allocation3 + $0x20] sm:$0xff]  ;;  %v115_v41 = vld [vmem:[#allocation3 + $0x28] sm:$0xff] }
  0x21   :  { %237 = vmatpush.msra.mxu1 %v220_v15  ;;  %v125_v39 = vld [vmem:[#allocation3 + $0x78] sm:$0xff]  ;;  %v116_v42 = vld [vmem:[#allocation3 + $0x30] sm:$0xff]  ;;  %v118_v44 = vld [vmem:[#allocation3 + $0x40] sm:$0xff] }
  0x22   :  { %153 = vmatpush.msra.mxu0 %v134_v12  ;;  %860 = vmatpush.msra.mxu3 %v134_v12  ;;  %v117_v43 = vld [vmem:[#allocation3 + $0x38] sm:$0xff]  ;;  %v119_v45 = vld [vmem:[#allocation3 + $0x48] sm:$0xff]  ;;  %v120_v46 = vld [vmem:[#allocation3 + $0x50] sm:$0xff] }
  0x23   :  { %238 = vmatpush.msra.mxu1 %v219_v17  ;;  %v121_v47 = vld [vmem:[#allocation3 + $0x58] sm:$0xff]  ;;  %v662_v49 = vld [vmem:[#allocation9 + $0x70] sm:$0xff]  ;;  %v661_v50 = vld [vmem:[#allocation9 + $0x68] sm:$0xff] }
  0x24   :  { %154 = vmatpush.msra.mxu0 %v133_v14  ;;  %861 = vmatpush.msra.mxu3 %v133_v14  ;;  %v663_v48 = vld [vmem:[#allocation9 + $0x78] sm:$0xff]  ;;  %v660_v51 = vld [vmem:[#allocation9 + $0x60] sm:$0xff]  ;;  %v658_v53 = vld [vmem:[#allocation9 + $0x50] sm:$0xff] }
  0x25   :  { %239 = vmatpush.msra.mxu1 %v218_v19  ;;  %664 = vmatpush.msra.mxu2 %v663_v48  ;;  %v659_v52 = vld [vmem:[#allocation9 + $0x58] sm:$0xff]  ;;  %v657_v54 = vld [vmem:[#allocation9 + $0x48] sm:$0xff]  ;;  %v656_v55 = vld [vmem:[#allocation9 + $0x40] sm:$0xff] }
  0x26   :  { %155 = vmatpush.msra.mxu0 %v132_v16  ;;  %862 = vmatpush.msra.mxu3 %v132_v16  ;;  %v655_v56 = vld [vmem:[#allocation9 + $0x38] sm:$0xff]  ;;  %v654_v57 = vld [vmem:[#allocation9 + $0x30] sm:$0xff]  ;;  %v653_v58 = vld [vmem:[#allocation9 + $0x28] sm:$0xff] }
  0x27   :  { %240 = vmatpush.msra.mxu1 %v217_v21  ;;  %665 = vmatpush.msra.mxu2 %v662_v49  ;;  %v652_v59 = vld [vmem:[#allocation9 + $0x20] sm:$0xff]  ;;  %v651_v60 = vld [vmem:[#allocation9 + $0x18] sm:$0xff]  ;;  %v650_v62 = vld [vmem:[#allocation9 + $0x10] sm:$0xff] }
  0x28   :  { %156 = vmatpush.msra.mxu0 %v131_v18  ;;  %863 = vmatpush.msra.mxu3 %v131_v18  ;;  %v1197_v61 = vld [vmem:[%s1502_s2] ss:$0 sm:$0xff]  ;;  %v649_v0 = vld [vmem:[#allocation9 + $0x8] sm:$0xff] }
  0x29   :  { %241 = vmatpush.msra.mxu1 %v216_v23  ;;  %666 = vmatpush.msra.mxu2 %v661_v50  ;;  %v648_v2 = vld [vmem:[#allocation9] sm:$0xff] }
  0x2a   :  { %157 = vmatpush.msra.mxu0 %v130_v20  ;;  %864 = vmatpush.msra.mxu3 %v130_v20 }
  0x2b   :  { %242 = vmatpush.msra.mxu1 %v215_v25  ;;  %667 = vmatpush.msra.mxu2 %v660_v51 }
  0x2c   :  { %158 = vmatpush.msra.mxu0 %v129_v22  ;;  %865 = vmatpush.msra.mxu3 %v129_v22 }
  0x2d   :  { %243 = vmatpush.msra.mxu1 %v214_v27  ;;  %668 = vmatpush.msra.mxu2 %v659_v52 }
  0x2e   :  { %159 = vmatpush.msra.mxu0 %v128_v24  ;;  %866 = vmatpush.msra.mxu3 %v128_v24 }
  0x2f   :  { %244 = vmatpush.msra.mxu1 %v213_v30  ;;  %669 = vmatpush.msra.mxu2 %v658_v53 }
  0x30   :  { %160 = vmatpush.msra.mxu0 %v127_v26  ;;  %867 = vmatpush.msra.mxu3 %v127_v26 }
  0x31   :  { %245 = vmatpush.msra.mxu1 %v212_v32  ;;  %670 = vmatpush.msra.mxu2 %v657_v54 }
  0x32   :  { %161 = vmatpush.msra.mxu0 %v126_v28  ;;  %868 = vmatpush.msra.mxu3 %v126_v28 }
  0x33   :  { %162 = vmatmul.f32.vlgmr.msra.gmra.mxu0 %v110_v29  ;;  %198 = vmatmul.f32.vlgmr.msra.gmra.mxu3 %v122_v31 }
  0x34   :  { %869 = vmatpush.msrb.mxu3 %v1174_v4  ;;  %246 = vmatpush.msra.mxu1 %v211_v33 }
  0x35   :  { %247 = vmatmul.f32.vlgmr.msra.gmra.mxu1 %v110_v29  ;;  %671 = vmatpush.msra.mxu2 %v656_v55 }
  0x36   :  { %870 = vmatpush.msrb.mxu3 %v1177_v6 }
  0x37   :  { %672 = vmatpush.msra.mxu2 %v655_v56 }
  0x38   :  { %871 = vmatpush.msrb.mxu3 %v1179_v7 }
  0x39   :  { %673 = vmatpush.msra.mxu2 %v654_v57 }
  0x3a   :  { %872 = vmatpush.msrb.mxu3 %v1182_v9 }
  0x3b   :  { %165 = vmatmul.f32.gmra.mxu0 %v111_v34  ;;  %201 = vmatmul.f32.gmra.mxu3 %v123_v35 }
  0x3c   :  { %873 = vmatpush.msrb.mxu3 %v1185_v11  ;;  %674 = vmatpush.msra.mxu2 %v653_v58 }
  0x3d   :  { %250 = vmatmul.f32.gmra.mxu1 %v111_v34 }
  0x3e   :  { %874 = vmatpush.msrb.mxu3 %v221_v13  ;;  %675 = vmatpush.msra.mxu2 %v652_v59 }
  0x40   :  { %875 = vmatpush.msrb.mxu3 %v220_v15  ;;  %676 = vmatpush.msra.mxu2 %v651_v60 }
  0x42   :  { %876 = vmatpush.msrb.mxu3 %v219_v17  ;;  %677 = vmatpush.msra.mxu2 %v650_v62 }
  0x43   :  { %168 = vmatmul.f32.gmra.mxu0 %v112_v36  ;;  %204 = vmatmul.f32.gmra.mxu3 %v124_v37 }
  0x44   :  { %877 = vmatpush.msrb.mxu3 %v218_v19  ;;  %678 = vmatpush.msra.mxu2 %v649_v0 }
  0x45   :  { %253 = vmatmul.f32.gmra.mxu1 %v112_v36 }
  0x46   :  { %878 = vmatpush.msrb.mxu3 %v217_v21  ;;  %679 = vmatpush.msra.mxu2 %v648_v2 }
  0x48   :  { %879 = vmatpush.msrb.mxu3 %v216_v23 }
  0x4a   :  { %880 = vmatpush.msrb.mxu3 %v215_v25 }
  0x4b   :  { %171 = vmatmul.f32.gmra.mxu0 %v113_v38  ;;  %207 = vmatmul.f32.gmra.mxu3 %v125_v39 }
  0x4c   :  { %881 = vmatpush.msrb.mxu3 %v214_v27 }
  0x4d   :  { %256 = vmatmul.f32.gmra.mxu1 %v113_v38 }
  0x4e   :  { %882 = vmatpush.msrb.mxu3 %v213_v30  ;;  %v1225_v30 = vld [vmem:[%s1504_s4] ss:$0 sm:$0xff] }
  0x50   :  { %883 = vmatpush.msrb.mxu3 %v212_v32 }
  0x52   :  { %884 = vmatpush.msrb.mxu3 %v211_v33 }
  0x53   :  { %174 = vmatmul.f32.gmra.mxu0 %v114_v40  ;;  %283 = vmatmul.f32.vlgmr.msrb.gmra.mxu3 %v122_v31 }
  0x54   :  { %885 = vmatpush.msra.mxu3 %v663_v48 }
  0x55   :  { %259 = vmatmul.f32.gmra.mxu1 %v114_v40 }
  0x56   :  { %886 = vmatpush.msra.mxu3 %v662_v49 }
  0x58   :  { %887 = vmatpush.msra.mxu3 %v661_v50 }
  0x5a   :  { %888 = vmatpush.msra.mxu3 %v660_v51 }
  0x5b   :  { %177 = vmatmul.f32.gmra.mxu0 %v115_v41  ;;  %286 = vmatmul.f32.gmra.mxu3 %v123_v35 }
  0x5c   :  { %889 = vmatpush.msra.mxu3 %v659_v52 }
  0x5d   :  { %262 = vmatmul.f32.gmra.mxu1 %v115_v41 }
  0x5e   :  { %890 = vmatpush.msra.mxu3 %v658_v53 }
  0x60   :  { %891 = vmatpush.msra.mxu3 %v657_v54 }
  0x62   :  { %892 = vmatpush.msra.mxu3 %v656_v55 }
  0x63   :  { %180 = vmatmul.f32.gmra.mxu0 %v116_v42  ;;  %289 = vmatmul.f32.gmra.mxu3 %v124_v37 }
  0x64   :  { %893 = vmatpush.msra.mxu3 %v655_v56 }
  0x65   :  { %265 = vmatmul.f32.gmra.mxu1 %v116_v42 }
  0x66   :  { %894 = vmatpush.msra.mxu3 %v654_v57 }
  0x68   :  { %895 = vmatpush.msra.mxu3 %v653_v58 }
  0x6a   :  { %896 = vmatpush.msra.mxu3 %v652_v59 }
  0x6b   :  { %183 = vmatmul.f32.gmra.mxu0 %v117_v43  ;;  %292 = vmatmul.f32.gmra.mxu3 %v125_v39 }
  0x6c   :  { %897 = vmatpush.msra.mxu3 %v651_v60 }
  0x6d   :  { %268 = vmatmul.f32.gmra.mxu1 %v117_v43 }
  0x6e   :  { %898 = vmatpush.msra.mxu3 %v650_v62 }
  0x70   :  { %899 = vmatpush.msra.mxu3 %v649_v0 }
  0x72   :  { %900 = vmatpush.msra.mxu3 %v648_v2 }
  0x73   :  { %186 = vmatmul.f32.gmra.mxu0 %v118_v44 }
  0x75   :  { %271 = vmatmul.f32.gmra.mxu1 %v118_v44 }
  0x7b   :  { %189 = vmatmul.f32.gmra.mxu0 %v119_v45 }
  0x7d   :  { %274 = vmatmul.f32.gmra.mxu1 %v119_v45 }
  0x83   :  { %192 = vmatmul.f32.gmra.mxu0 %v120_v46 }
  0x85   :  { %277 = vmatmul.f32.gmra.mxu1 %v120_v46 }
  0x8b   :  { %195 = vmatmul.f32.gmra.mxu0 %v121_v47 }
  0x8d   :  { %280 = vmatmul.f32.gmra.mxu1 %v121_v47 }
  0xb0   :  { %v163_v63 = vpop.f32.mrf.mxu0 }
  0xb1   :  { %v1200_v1 = vadd.f32 %v1197_v61, %v163_v63 }
  0xb2   :  { %v248_v4 = vpop.f32.mrf.mxu1 }
  0xb3   :  { %v837_v3 = vmul.f32 -1.442695, %v1200_v1  ;;  %v249_v44 = vadd.f32 %v1225_v30, %v248_v4 }
  0xb5   :  { %911 = vpow2.f32 %v837_v3 }
  0xb6   :  { %v199_v5 = vpop.f32.mrf.mxu3 }
  0xb7   :  { %v1204_v7 = vadd.f32 %v1197_v61, %v199_v5 }
  0xb8   :  { %v166_v6 = vpop.f32.mrf.mxu0 }
  0xb9   :  { %v1207_v8 = vadd.f32 %v1197_v61, %v166_v6  ;;  %v849_v9 = vmul.f32 -1.442695, %v1204_v7 }
  0xba   :  { %v251_v13 = vpop.f32.mrf.mxu1 }
  0xbb   :  { %v912_v10 = vpop.eup %911  ;;  %v838_v11 = vmul.f32 -1.442695, %v1207_v8  ;;  %913 = vpow2.f32 %v849_v9  ;;  %v252_v56 = vadd.f32 %v1225_v30, %v251_v13 }
  0xbc   :  { %v344_v12 = vadd.f32 1.0, %v912_v10 }
  0xbd   :  { %915 = vpow2.f32 %v838_v11 }
  0xbe   :  { %917 = vrcp.f32 %v344_v12  ;;  %v202_v14 = vpop.f32.mrf.mxu3  ;;  %v371_v28 = vand.u32 2147483648, %v344_v12  ;;  %v369_v33 = vand.u32 2147483647, %v344_v12  ;;  %vm365_vm1 = vweird.f32 %v344_v12 }
  0xbf   :  { %v1212_v16 = vadd.f32 %v1197_v61, %v202_v14 }
  0xc0   :  { %v169_v15 = vpop.f32.mrf.mxu0  ;;  %v372_v42 = vor.u32 1.1754944e-38, %v371_v28  ;;  %vm370_vm3 = vcmp.eq.f32.partialorder %v369_v33, 8.507059e+37 }
  0xc1   :  { %v1215_v17 = vadd.f32 %v1197_v61, %v169_v15  ;;  %v914_v18 = vpop.eup %913  ;;  %v850_v19 = vmul.f32 -1.442695, %v1212_v16 }
  0xc2   :  { %v1219_v22 = vadd.f32 1.0, %v914_v18  ;;  %v254_v35 = vpop.f32.mrf.mxu1 }
  0xc3   :  { %v916_v20 = vpop.eup %915  ;;  %v839_v21 = vmul.f32 -1.442695, %v1215_v17  ;;  %919 = vpow2.f32 %v850_v19  ;;  %v1253_v63 = vadd.f32 %v1225_v30, %v254_v35 }
  0xc4   :  { %v918_v23 = vpop.eup %917  ;;  %v345_v24 = vadd.f32 1.0, %v916_v20  ;;  %v551_v13 = vand.u32 2147483648, %v1219_v22  ;;  %vm545_vm10 = vweird.f32 %v1219_v22 }
  0xc5   :  { %v361_v25 = vmul.f32 %v918_v23, %v344_v12  ;;  %921 = vpow2.f32 %v839_v21  ;;  %vm366_vm0 = vweird.f32 %v918_v23  ;;  %v549_v12 = vand.u32 2147483647, %v1219_v22 }
  0xc6   :  { %923 = vrcp.f32 %v345_v24  ;;  %v205_v27 = vpop.f32.mrf.mxu3  ;;  %vm367_vm2 = vmor %vm365_vm1, %vm366_vm0  ;;  %v384_v49 = vand.u32 2147483647, %v345_v24  ;;  %vm380_vm4 = vweird.f32 %v345_v24  ;;  %v386_v54 = vand.u32 2147483648, %v345_v24 }
  0xc7   :  { %v362_v26 = vsub.f32 1.0, %v361_v25  ;;  %925 = vrcp.f32 %v1219_v22  ;;  %v1228_v31 = vadd.f32 %v1197_v61, %v205_v27  ;;  %vm1282_vm12 = vcmp.eq.f32.partialorder %v549_v12, 8.507059e+37 }
  0xc8   :  { %v172_v29 = vpop.f32.mrf.mxu0  ;;  %vm1255_vm6 = vcmp.eq.f32.partialorder %v384_v49, 8.507059e+37  ;;  %v387_v10 = vor.u32 1.1754944e-38, %v386_v54  ;;  %v552_v28 = vor.u32 1.1754944e-38, %v551_v13 }
  0xc9   :  { %v363_v32 = vmul.f32 %v918_v23, %v362_v26  ;;  %v1231_v34 = vadd.f32 %v1197_v61, %v172_v29  ;;  %v920_v36 = vpop.eup %919  ;;  %v851_v40 = vmul.f32 -1.442695, %v1228_v31 }
  0xca   :  { %v1241_v50 = vadd.f32 1.0, %v920_v36  ;;  %v257_v5 = vpop.f32.mrf.mxu1 }
  0xcb   :  { %v922_v37 = vpop.eup %921  ;;  %v364_v38 = vadd.f32 %v918_v23, %v363_v32  ;;  %v840_v39 = vmul.f32 -1.442695, %v1231_v34 }
  0xcc   :  { %v924_v41 = vpop.eup %923  ;;  %v1235_v43 = vadd.f32 1.0, %v922_v37 }
  0xcd   :  { %v1238_v45 = vpop.eup %925  ;;  %v368_v46 = vsel %vm367_vm2, %v918_v23, %v364_v38  ;;  %v376_v47 = vmul.f32 %v924_v41, %v345_v24  ;;  %927 = vpow2.f32 %v840_v39  ;;  %vm381_vm5 = vweird.f32 %v924_v41 }
  0xce   :  { %v373_v48 = vsel %vm370_vm3, %v372_v42, %v368_v46  ;;  %929 = vrcp.f32 %v1235_v43  ;;  %v541_v53 = vmul.f32 %v1238_v45, %v1219_v22  ;;  %v399_v60 = vand.u32 2147483647, %v1235_v43  ;;  %v208_v6 = vpop.f32.mrf.mxu3  ;;  %vm382_vm7 = vmor %vm380_vm4, %vm381_vm5 }
  0xcf   :  { %v600_v51 = vmul.f32 %v373_v48, %v1200_v1  ;;  %v377_v52 = vsub.f32 1.0, %v376_v47  ;;  %931 = vpow2.f32 %v851_v40  ;;  %v401_v3 = vand.u32 2147483648, %v1235_v43 }
  0xd0   :  { %v175_v55 = vpop.f32.mrf.mxu0  ;;  %v542_v59 = vsub.f32 1.0, %v541_v53  ;;  %933 = vrcp.f32 %v1241_v50  ;;  %vm395_vm8 = vweird.f32 %v1235_v43  ;;  %vm1272_vm9 = vcmp.eq.f32.partialorder %v399_v60, 8.507059e+37 }
  0xd1   :  { %v378_v57 = vmul.f32 %v924_v41, %v377_v52  ;;  %v1248_v58 = vadd.f32 %v1197_v61, %v175_v55  ;;  %v616_v62 = vmul.f32 %v600_v51, %v249_v44  ;;  %v402_v24 = vor.u32 1.1754944e-38, %v401_v3 }
  0xd2   :  { %v543_v19 = vmul.f32 %v1238_v45, %v542_v59  ;;  %vm546_vm11 = vweird.f32 %v1238_v45  ;;  %v1300_v38 = vadd.f32 %v1225_v30, %v257_v5  ;;  %v1303_v39 = vadd.f32 %v1197_v61, %v208_v6  ;;  %v1317_v54 = vpop.f32.mrf.mxu1 }
  0xd3   :  { %v928_v0 = vpop.eup %927  ;;  %v379_v1 = vadd.f32 %v924_v41, %v378_v57  ;;  %v841_v4 = vmul.f32 -1.442695, %v1248_v58  ;;  %680 = vmatmul.f32.vlgmr.msra.gmra.mxu2 %v616_v62  ;;  %vm1293_vm14 = vmor %vm545_vm10, %vm546_vm11  ;;  %v566_v62 = vand.u32 2147483648, %v1241_v50  ;;  %vm560_vm2 = vweird.f32 %v1241_v50 }
  0xd4   :  { %v930_v9 = vpop.eup %929  ;;  %v1263_v11 = vadd.f32 1.0, %v928_v0  ;;  %v544_v35 = vadd.f32 %v1238_v45, %v543_v19  ;;  %v852_v12 = vmul.f32 -1.442695, %v1303_v39 }
  0xd5   :  { %v932_v14 = vpop.eup %931  ;;  %v383_v15 = vsel %vm382_vm7, %v924_v41, %v379_v1  ;;  %v391_v18 = vmul.f32 %v930_v9, %v1235_v43  ;;  %935 = vpow2.f32 %v841_v4  ;;  %vm396_vm13 = vweird.f32 %v930_v9 }
  0xd6   :  { %v388_v20 = vsel %vm1255_vm6, %v387_v10, %v383_v15  ;;  %937 = vrcp.f32 %v1263_v11  ;;  %v1279_v25 = vpop.eup %933  ;;  %v1286_v32 = vadd.f32 1.0, %v932_v14  ;;  %v414_v36 = vand.u32 2147483647, %v1263_v11  ;;  %vm397_vm0 = vmor %vm395_vm8, %vm396_vm13  ;;  %v284_v55 = vpop.f32.mrf.mxu3 }
  0xd7   :  { %v392_v23 = vsub.f32 1.0, %v391_v18  ;;  %v601_v26 = vmul.f32 %v388_v20, %v1207_v8  ;;  %v556_v8 = vmul.f32 %v1279_v25, %v1241_v50  ;;  %vm410_vm15 = vweird.f32 %v1263_v11 }
  0xd8   :  { %v178_v29 = vpop.f32.mrf.mxu0  ;;  %v416_v42 = vand.u32 2147483648, %v1263_v11  ;;  %939 = vrcp.f32 %v1286_v32  ;;  %v548_v53 = vsel %vm1293_vm14, %v1238_v45, %v544_v35  ;;  %vm1321_vm1 = vcmp.eq.f32.partialorder %v414_v36, 8.507059e+37 }
  0xd9   :  { %v393_v33 = vmul.f32 %v930_v9, %v392_v23  ;;  %v1290_v22 = vadd.f32 %v1197_v61, %v178_v29  ;;  %v557_v48 = vsub.f32 1.0, %v556_v8  ;;  %v617_v49 = vmul.f32 %v601_v26, %v252_v56 }
  0xda   :  { %v564_v56 = vand.u32 2147483647, %v1241_v50  ;;  %v417_v0 = vor.u32 1.1754944e-38, %v416_v42  ;;  %v553_v1 = vsel %vm1282_vm12, %v552_v28, %v548_v53  ;;  %vm561_vm3 = vweird.f32 %v1279_v25  ;;  %v1378_v35 = vpop.f32.mrf.mxu1 }
  0xdb   :  { %v936_v40 = vpop.eup %935  ;;  %v394_v41 = vadd.f32 %v930_v9, %v393_v33  ;;  %v842_v44 = vmul.f32 -1.442695, %v1290_v22  ;;  %683 = vmatmul.f32.gmra.mxu2 %v617_v49  ;;  %v558_v45 = vmul.f32 %v1279_v25, %v557_v48  ;;  %v612_v15 = vmul.f32 %v553_v1, %v1204_v7  ;;  %vm1350_vm6 = vmor %vm560_vm2, %vm561_vm3 }
  0xdc   :  { %v938_v46 = vpop.eup %937  ;;  %v1310_v47 = vadd.f32 1.0, %v936_v40  ;;  %vm1341_vm5 = vcmp.eq.f32.partialorder %v564_v56, 8.507059e+37  ;;  %v567_v19 = vor.u32 1.1754944e-38, %v566_v62  ;;  %vm575_vm10 = vweird.f32 %v1286_v32 }
  0xdd   :  { %v398_v51 = vsel %vm397_vm0, %v930_v9, %v394_v41  ;;  %v406_v52 = vmul.f32 %v938_v46, %v1263_v11  ;;  %941 = vpow2.f32 %v842_v44  ;;  %vm411_vm4 = vweird.f32 %v938_v46 }
  0xde   :  { %v403_v43 = vsel %vm1272_vm9, %v402_v24, %v398_v51  ;;  %943 = vrcp.f32 %v1310_v47  ;;  %v429_v4 = vand.u32 2147483647, %v1310_v47  ;;  %v1338_v5 = vpop.eup %939  ;;  %v559_v6 = vadd.f32 %v1279_v25, %v558_v45  ;;  %vm412_vm7 = vmor %vm410_vm15, %vm411_vm4  ;;  %v287_v36 = vpop.f32.mrf.mxu3 }
  0xdf   :  { %v602_v59 = vmul.f32 %v403_v43, %v1215_v17  ;;  %v407_v60 = vsub.f32 1.0, %v406_v52  ;;  %vm425_vm8 = vweird.f32 %v1310_v47  ;;  %v571_v7 = vmul.f32 %v1338_v5, %v1286_v32 }
  0xe0   :  { %v181_v2 = vpop.f32.mrf.mxu0  ;;  %945 = vpow2.f32 %v852_v12  ;;  %vm1364_vm9 = vcmp.eq.f32.partialorder %v429_v4, 8.507059e+37  ;;  %v431_v26 = vand.u32 2147483648, %v1310_v47  ;;  %v563_v27 = vsel %vm1350_vm6, %v1279_v25, %v559_v6 }
  0xe1   :  { %v408_v3 = vmul.f32 %v938_v46, %v407_v60  ;;  %v1336_v17 = vadd.f32 %v1197_v61, %v181_v2  ;;  %v618_v10 = vmul.f32 %v602_v59, %v1253_v63  ;;  %v579_v33 = vand.u32 2147483647, %v1286_v32 }
  0xe2   :  { %v572_v37 = vsub.f32 1.0, %v571_v7  ;;  %vm576_vm11 = vweird.f32 %v1338_v5  ;;  %v581_v8 = vand.u32 2147483648, %v1286_v32  ;;  %v285_v25 = vadd.f32 %v1225_v30, %v284_v55 }
  0xe3   :  { %v942_v13 = vpop.eup %941  ;;  %v409_v14 = vadd.f32 %v938_v46, %v408_v3  ;;  %v843_v20 = vmul.f32 -1.442695, %v1336_v17  ;;  %686 = vmatmul.f32.gmra.mxu2 %v618_v10  ;;  %vm1392_vm13 = vmor %vm575_vm10, %vm576_vm11  ;;  %vm1396_vm14 = vcmp.eq.f32.partialorder %v579_v33, 8.507059e+37  ;;  %v288_v60 = vadd.f32 %v1225_v30, %v287_v36 }
  0xe4   :  { %v944_v21 = vpop.eup %943  ;;  %v1359_v63 = vadd.f32 1.0, %v942_v13  ;;  %v573_v48 = vmul.f32 %v1338_v5, %v572_v37  ;;  %v628_v51 = vmul.f32 %v612_v15, %v285_v25  ;;  %v582_v59 = vor.u32 1.1754944e-38, %v581_v8 }
  0xe5   :  { %v413_v50 = vsel %vm412_vm7, %v938_v46, %v409_v14  ;;  %v421_v23 = vmul.f32 %v944_v21, %v1310_v47  ;;  %vm426_vm12 = vweird.f32 %v944_v21  ;;  %v432_v46 = vor.u32 1.1754944e-38, %v431_v26 }
  0xe6   :  { %v418_v11 = vsel %vm1321_vm1, %v417_v0, %v413_v50  ;;  %947 = vrcp.f32 %v1359_v63  ;;  %v946_v44 = vpop.eup %945  ;;  %vm427_vm15 = vmor %vm425_vm8, %vm426_vm12  ;;  %v574_v32 = vadd.f32 %v1338_v5, %v573_v48  ;;  %716 = vmatmul.f32.vlgmr.msra.gmra.mxu3 %v628_v51  ;;  %v261_v1 = vadd.f32 %v1225_v30, %v1317_v54  ;;  %v290_v14 = vpop.f32.mrf.mxu3 }
  0xe7   :  { %v603_v28 = vmul.f32 %v418_v11, %v1231_v34  ;;  %v422_v29 = vsub.f32 1.0, %v421_v23  ;;  %949 = vpow2.f32 %v843_v20  ;;  %v568_v34 = vsel %vm1341_vm5, %v567_v19, %v563_v27 }
  0xe8   :  { %v184_v40 = vpop.f32.mrf.mxu0  ;;  %v1401_v57 = vadd.f32 1.0, %v946_v44  ;;  %v446_v6 = vand.u32 2147483648, %v1359_v63  ;;  %v444_v12 = vand.u32 2147483647, %v1359_v63  ;;  %vm440_vm1 = vweird.f32 %v1359_v63 }
  0xe9   :  { %v423_v41 = vmul.f32 %v944_v21, %v422_v29  ;;  %v1386_v42 = vadd.f32 %v1197_v61, %v184_v40  ;;  %v619_v49 = vmul.f32 %v603_v28, %v1300_v38  ;;  %v613_v38 = vmul.f32 %v568_v34, %v1212_v16 }
  0xea   :  { %v578_v16 = vsel %vm1392_vm13, %v1338_v5, %v574_v32  ;;  %v266_v5 = vpop.f32.mrf.mxu1  ;;  %v447_v20 = vor.u32 1.1754944e-38, %v446_v6  ;;  %v291_v24 = vadd.f32 %v1225_v30, %v290_v14  ;;  %vm445_vm3 = vcmp.eq.f32.partialorder %v444_v12, 8.507059e+37 }
  0xeb   :  { %v424_v52 = vadd.f32 %v944_v21, %v423_v41  ;;  %v844_v43 = vmul.f32 -1.442695, %v1386_v42  ;;  %689 = vmatmul.f32.gmra.mxu2 %v619_v49  ;;  %v629_v9 = vmul.f32 %v613_v38, %v288_v60  ;;  %v583_v13 = vsel %vm1396_vm14, %v582_v59, %v578_v16 }
  0xec   :  { %v948_v56 = vpop.eup %947  ;;  %v614_v7 = vmul.f32 %v583_v13, %v1228_v31  ;;  %vm590_vm4 = vweird.f32 %v1401_v57  ;;  %v264_v31 = vadd.f32 %v1225_v30, %v1378_v35  ;;  %v594_v33 = vand.u32 2147483647, %v1401_v57 }
  0xed   :  { %v950_v45 = vpop.eup %949  ;;  %v428_v62 = vsel %vm427_vm15, %v944_v21, %v424_v52  ;;  %v436_v0 = vmul.f32 %v948_v56, %v1359_v63  ;;  %951 = vpow2.f32 %v844_v43  ;;  %vm441_vm0 = vweird.f32 %v948_v56 }
  0xee   :  { %v433_v47 = vsel %vm1364_vm9, %v432_v46, %v428_v62  ;;  %v1413_v2 = vadd.f32 1.0, %v950_v45  ;;  %953 = vrcp.f32 %v1401_v57  ;;  %vm442_vm2 = vmor %vm440_vm1, %vm441_vm0  ;;  %719 = vmatmul.f32.gmra.mxu3 %v629_v9  ;;  %v596_v36 = vand.u32 2147483648, %v1401_v57  ;;  %v293_v53 = vpop.f32.mrf.mxu3 }
  0xef   :  { %v604_v3 = vmul.f32 %v433_v47, %v1248_v58  ;;  %v437_v4 = vsub.f32 1.0, %v436_v0  ;;  %v630_v40 = vmul.f32 %v614_v7, %v291_v24  ;;  %vm1455_vm8 = vcmp.eq.f32.partialorder %v594_v33, 8.507059e+37 }
  0xf0   :  { %955 = vrcp.f32 %v1413_v2  ;;  %v187_v54 = vpop.f32.mrf.mxu0  ;;  %v459_v34 = vand.u32 2147483647, %v1413_v2  ;;  %v461_v35 = vand.u32 2147483648, %v1413_v2  ;;  %v597_v49 = vor.u32 1.1754944e-38, %v596_v36 }
  0xf1   :  { %v438_v10 = vmul.f32 %v948_v56, %v437_v4  ;;  %v1426_v15 = vadd.f32 %v1197_v61, %v187_v54  ;;  %v620_v58 = vmul.f32 %v604_v3, %v261_v1  ;;  %v267_v38 = vadd.f32 %v1225_v30, %v266_v5 }
  0xf2   :  { %v269_v52 = vpop.f32.mrf.mxu1  ;;  %vm455_vm9 = vweird.f32 %v1413_v2  ;;  %vm460_vm11 = vcmp.eq.f32.partialorder %v459_v34, 8.507059e+37  ;;  %v462_v60 = vor.u32 1.1754944e-38, %v461_v35  ;;  %v294_v62 = vadd.f32 %v1225_v30, %v293_v53 }
  0xf3   :  { %v952_v18 = vpop.eup %951  ;;  %v439_v19 = vadd.f32 %v948_v56, %v438_v10  ;;  %v845_v23 = vmul.f32 -1.442695, %v1426_v15  ;;  %692 = vmatmul.f32.gmra.mxu2 %v620_v58  ;;  %v270_v7 = vadd.f32 %v1225_v30, %v269_v52 }
  0xf4   :  { %v954_v21 = vpop.eup %953  ;;  %v1430_v50 = vadd.f32 1.0, %v952_v18 }
  0xf5   :  { %v443_v26 = vsel %vm442_vm2, %v948_v56, %v439_v19  ;;  %v586_v11 = vmul.f32 %v954_v21, %v1401_v57  ;;  %vm591_vm5 = vweird.f32 %v954_v21 }
  0xf6   :  { %v956_v27 = vpop.eup %955  ;;  %v448_v28 = vsel %vm445_vm3, %v447_v20, %v443_v26  ;;  %957 = vrcp.f32 %v1430_v50  ;;  %vm1450_vm7 = vmor %vm590_vm4, %vm591_vm5  ;;  %722 = vmatmul.f32.gmra.mxu3 %v630_v40  ;;  %v474_v3 = vand.u32 2147483647, %v1430_v50  ;;  %v476_v4 = vand.u32 2147483648, %v1430_v50 }
  0xf7   :  { %v605_v63 = vmul.f32 %v448_v28, %v1290_v22  ;;  %v451_v29 = vmul.f32 %v956_v27, %v1413_v2  ;;  %v587_v37 = vsub.f32 1.0, %v586_v11  ;;  %959 = vpow2.f32 %v845_v23 }
  0xf8   :  { %v190_v8 = vpop.f32.mrf.mxu0  ;;  %vm456_vm6 = vweird.f32 %v956_v27  ;;  %vm470_vm13 = vweird.f32 %v1430_v50  ;;  %v477_v18 = vor.u32 1.1754944e-38, %v476_v4  ;;  %vm475_vm15 = vcmp.eq.f32.partialorder %v474_v3, 8.507059e+37 }
  0xf9   :  { %v452_v25 = vsub.f32 1.0, %v451_v29  ;;  %v1444_v41 = vadd.f32 %v1197_v61, %v190_v8  ;;  %v588_v22 = vmul.f32 %v954_v21, %v587_v37  ;;  %v621_v44 = vmul.f32 %v605_v63, %v264_v31  ;;  %vm457_vm10 = vmor %vm455_vm9, %vm456_vm6 }
  0xfb   :  { %v453_v46 = vmul.f32 %v956_v27, %v452_v25  ;;  %v846_v51 = vmul.f32 -1.442695, %v1444_v41  ;;  %v589_v43 = vadd.f32 %v954_v21, %v588_v22  ;;  %695 = vmatmul.f32.gmra.mxu2 %v621_v44 }
  0xfc   :  { %v958_v55 = vpop.eup %957 }
  0xfd   :  { %v454_v32 = vadd.f32 %v956_v27, %v453_v46  ;;  %v466_v57 = vmul.f32 %v958_v55, %v1430_v50  ;;  %961 = vpow2.f32 %v846_v51  ;;  %v960_v59 = vpop.eup %959  ;;  %v593_v45 = vsel %vm1450_vm7, %v954_v21, %v589_v43 }
  0xfe   :  { %v598_v47 = vsel %vm1455_vm8, %v597_v49, %v593_v45  ;;  %v352_v2 = vadd.f32 1.0, %v960_v59  ;;  %vm471_vm12 = vweird.f32 %v958_v55 }
  0xff   :  { %v458_v0 = vsel %vm457_vm10, %v956_v27, %v454_v32  ;;  %v467_v1 = vsub.f32 1.0, %v466_v57  ;;  %v615_v6 = vmul.f32 %v598_v47, %v1303_v39  ;;  %vm472_vm14 = vmor %vm470_vm13, %vm471_vm12 }
 0x100   :  { %v463_v16 = vsel %vm460_vm11, %v462_v60, %v458_v0  ;;  %v193_v54 = vpop.f32.mrf.mxu0  ;;  %963 = vrcp.f32 %v352_v2  ;;  %v491_v31 = vand.u32 2147483648, %v352_v2  ;;  %v489_v36 = vand.u32 2147483647, %v352_v2 }
 0x101   :  { %v606_v9 = vmul.f32 %v463_v16, %v1336_v17  ;;  %v468_v10 = vmul.f32 %v958_v55, %v467_v1  ;;  %v1473_v12 = vadd.f32 %v1197_v61, %v193_v54  ;;  %v631_v13 = vmul.f32 %v615_v6, %v294_v62  ;;  %v272_v17 = vpop.f32.mrf.mxu1 }
 0x102   :  { %vm485_vm1 = vweird.f32 %v352_v2  ;;  %v492_v25 = vor.u32 1.1754944e-38, %v491_v31  ;;  %v273_v34 = vadd.f32 %v1225_v30, %v272_v17  ;;  %vm490_vm3 = vcmp.eq.f32.partialorder %v489_v36, 8.507059e+37 }
 0x103   :  { %v962_v5 = vpop.eup %961  ;;  %v469_v14 = vadd.f32 %v958_v55, %v468_v10  ;;  %v622_v58 = vmul.f32 %v606_v9, %v267_v38  ;;  %v847_v39 = vmul.f32 -1.442695, %v1473_v12  ;;  %725 = vmatmul.f32.gmra.mxu3 %v631_v13 }
 0x104   :  { %v353_v19 = vadd.f32 1.0, %v962_v5 }
 0x105   :  { %v473_v20 = vsel %vm472_vm14, %v958_v55, %v469_v14  ;;  %698 = vmatmul.f32.gmra.mxu2 %v622_v58 }
 0x106   :  { %v478_v21 = vsel %vm475_vm15, %v477_v18, %v473_v20  ;;  %965 = vrcp.f32 %v353_v19  ;;  %v964_v23 = vpop.eup %963  ;;  %v506_v44 = vand.u32 2147483648, %v353_v19  ;;  %v504_v49 = vand.u32 2147483647, %v353_v19 }
 0x107   :  { %v607_v24 = vmul.f32 %v478_v21, %v1386_v42  ;;  %967 = vpow2.f32 %v847_v39  ;;  %v481_v50 = vmul.f32 %v964_v23, %v352_v2  ;;  %vm486_vm0 = vweird.f32 %v964_v23 }
 0x108   :  { %v196_v26 = vpop.f32.mrf.mxu0  ;;  %vm487_vm2 = vmor %vm485_vm1, %vm486_vm0  ;;  %vm500_vm5 = vweird.f32 %v353_v19  ;;  %v507_v55 = vor.u32 1.1754944e-38, %v506_v44  ;;  %vm505_vm7 = vcmp.eq.f32.partialorder %v504_v49, 8.507059e+37 }
 0x109   :  { %v1480_v11 = vadd.f32 %v1197_v61, %v196_v26  ;;  %v482_v27 = vsub.f32 1.0, %v481_v50  ;;  %v623_v28 = vmul.f32 %v607_v24, %v270_v7  ;;  %v275_v35 = vpop.f32.mrf.mxu1 }
 0x10a   :  { %v276_v59 = vadd.f32 %v1225_v30, %v275_v35 }
 0x10b   :  { %v848_v63 = vmul.f32 -1.442695, %v1480_v11  ;;  %v483_v33 = vmul.f32 %v964_v23, %v482_v27 }
 0x10c   :  { %v966_v29 = vpop.eup %965 }
 0x10d   :  { %v968_v37 = vpop.eup %967  ;;  %v496_v8 = vmul.f32 %v966_v29, %v353_v19  ;;  %969 = vpow2.f32 %v848_v63  ;;  %v484_v40 = vadd.f32 %v964_v23, %v483_v33  ;;  %701 = vmatmul.f32.gmra.mxu2 %v623_v28  ;;  %vm501_vm4 = vweird.f32 %v966_v29 }
 0x10e   :  { %v354_v42 = vadd.f32 1.0, %v968_v37  ;;  %vm502_vm6 = vmor %vm500_vm5, %vm501_vm4 }
 0x10f   :  { %v497_v61 = vsub.f32 1.0, %v496_v8  ;;  %v488_v22 = vsel %vm487_vm2, %v964_v23, %v484_v40 }
 0x110   :  { %971 = vrcp.f32 %v354_v42  ;;  %v493_v46 = vsel %vm490_vm3, %v492_v25, %v488_v22  ;;  %v521_v0 = vand.u32 2147483648, %v354_v42  ;;  %v519_v2 = vand.u32 2147483647, %v354_v42 }
 0x111   :  { %v498_v48 = vmul.f32 %v966_v29, %v497_v61  ;;  %v608_v51 = vmul.f32 %v493_v46, %v1426_v15  ;;  %v278_v15 = vpop.f32.mrf.mxu1  ;;  %vm515_vm9 = vweird.f32 %v354_v42 }
 0x112   :  { %v522_v6 = vor.u32 1.1754944e-38, %v521_v0  ;;  %vm520_vm11 = vcmp.eq.f32.partialorder %v519_v2, 8.507059e+37 }
 0x113   :  { %v970_v52 = vpop.eup %969  ;;  %v499_v53 = vadd.f32 %v966_v29, %v498_v48  ;;  %v624_v56 = vmul.f32 %v608_v51, %v273_v34 }
 0x114   :  { %v355_v43 = vadd.f32 1.0, %v970_v52 }
 0x115   :  { %v503_v38 = vsel %vm502_vm6, %v966_v29, %v499_v53  ;;  %704 = vmatmul.f32.gmra.mxu2 %v624_v56 }
 0x116   :  { %v972_v32 = vpop.eup %971  ;;  %v508_v57 = vsel %vm505_vm7, %v507_v55, %v503_v38  ;;  %973 = vrcp.f32 %v355_v43  ;;  %v536_v13 = vand.u32 2147483648, %v355_v43  ;;  %v534_v58 = vand.u32 2147483647, %v355_v43 }
 0x117   :  { %v609_v60 = vmul.f32 %v508_v57, %v1444_v41  ;;  %v511_v45 = vmul.f32 %v972_v32, %v354_v42  ;;  %vm516_vm8 = vweird.f32 %v972_v32  ;;  %v279_v41 = vadd.f32 %v1225_v30, %v278_v15 }
 0x118   :  { %vm517_vm10 = vmor %vm515_vm9, %vm516_vm8  ;;  %vm530_vm13 = vweird.f32 %v355_v43  ;;  %v537_v20 = vor.u32 1.1754944e-38, %v536_v13  ;;  %vm535_vm15 = vcmp.eq.f32.partialorder %v534_v58, 8.507059e+37 }
 0x119   :  { %v512_v62 = vsub.f32 1.0, %v511_v45  ;;  %v625_v1 = vmul.f32 %v609_v60, %v276_v59  ;;  %v281_v39 = vpop.f32.mrf.mxu1 }
 0x11a   :  { %v282_v7 = vadd.f32 %v1225_v30, %v281_v39 }
 0x11b   :  { %v513_v47 = vmul.f32 %v972_v32, %v512_v62 }
 0x11c   :  { %v974_v16 = vpop.eup %973 }
 0x11d   :  { %v514_v3 = vadd.f32 %v972_v32, %v513_v47  ;;  %v526_v4 = vmul.f32 %v974_v16, %v355_v43  ;;  %707 = vmatmul.f32.gmra.mxu2 %v625_v1  ;;  %vm531_vm12 = vweird.f32 %v974_v16 }
 0x11e   :  { %vm532_vm14 = vmor %vm530_vm13, %vm531_vm12 }
 0x11f   :  { %v518_v54 = vsel %vm517_vm10, %v972_v32, %v514_v3  ;;  %v527_v9 = vsub.f32 1.0, %v526_v4 }
 0x120   :  { %v523_v10 = vsel %vm520_vm11, %v522_v6, %v518_v54 }
 0x121   :  { %v610_v5 = vmul.f32 %v523_v10, %v1473_v12  ;;  %v528_v14 = vmul.f32 %v974_v16, %v527_v9  ;;  %v910_v12 = vld [vmem:[%s1506_s6] ss:$0 sm:$0xff]  ;;  %s1109_s6 = smov [#allocation11]  }
 0x122   :  { %s820_s23 = sshll.u32 %s1109_s6, 4  ;;  %s821_s23 = int_to_ptr.vmem [resolvable:$true] %s820_s23 }
 0x123   :  { %v529_v18 = vadd.f32 %v974_v16, %v528_v14  ;;  %v626_v19 = vmul.f32 %v610_v5, %v279_v41 }
 0x125   :  { %v533_v17 = vsel %vm532_vm14, %v974_v16, %v529_v18  ;;  %710 = vmatmul.f32.gmra.mxu2 %v626_v19 }
 0x126   :  { %v538_v21 = vsel %vm535_vm15, %v537_v20, %v533_v17 }
 0x127   :  { %v611_v23 = vmul.f32 %v538_v21, %v1480_v11 }
 0x129   :  { %v627_v24 = vmul.f32 %v611_v23, %v282_v7 }
 0x12d   :  { %713 = vmatmul.f32.gmra.mxu2 %v627_v24 }
 0x156   :  { %v681_v50 = vpop.f32.mrf.mxu2 }
 0x157   :  { %v784_v26 = vadd.f32 %v910_v12, %v681_v50 }
 0x159   :  { %800 = vst [vmem:[#allocation11] sm:$0xff] %v784_v26 }
 0x15e   :  { %v684_v27 = vpop.f32.mrf.mxu2 }
 0x15f   :  { %v785_v28 = vadd.f32 %v910_v12, %v684_v27 }
 0x161   :  { %801 = vst [vmem:[#allocation11 + $0x8] sm:$0xff] %v785_v28 }
 0x166   :  { %v687_v31 = vpop.f32.mrf.mxu2 }
 0x167   :  { %v786_v63 = vadd.f32 %v910_v12, %v687_v31 }
 0x169   :  { %802 = vst [vmem:[#allocation11 + $0x10] sm:$0xff] %v786_v63  ;;  %v717_v29 = vpop.f32.mrf.mxu3 }
 0x16a   :  { %v796_v33 = vadd.f32 %v910_v12, %v717_v29 }
 0x16c   :  { %812 = vst [vmem:[#allocation11 + $0x60] sm:$0xff] %v796_v33 }
 0x16e   :  { %v690_v30 = vpop.f32.mrf.mxu2 }
 0x16f   :  { %v787_v36 = vadd.f32 %v910_v12, %v690_v30 }
 0x171   :  { %803 = vst [vmem:[#allocation11 + $0x18] sm:$0xff] %v787_v36  ;;  %v720_v11 = vpop.f32.mrf.mxu3 }
 0x172   :  { %v797_v37 = vadd.f32 %v910_v12, %v720_v11 }
 0x174   :  { %813 = vst [vmem:[#allocation11 + $0x68] sm:$0xff] %v797_v37 }
 0x176   :  { %v693_v8 = vpop.f32.mrf.mxu2 }
 0x177   :  { %v788_v40 = vadd.f32 %v910_v12, %v693_v8 }
 0x179   :  { %804 = vst [vmem:[#allocation11 + $0x20] sm:$0xff] %v788_v40  ;;  %v723_v42 = vpop.f32.mrf.mxu3 }
 0x17a   :  { %v798_v25 = vadd.f32 %v910_v12, %v723_v42 }
 0x17c   :  { %814 = vst [vmem:[#allocation11 + $0x70] sm:$0xff] %v798_v25 }
 0x17e   :  { %v696_v61 = vpop.f32.mrf.mxu2 }
 0x17f   :  { %v789_v34 = vadd.f32 %v910_v12, %v696_v61 }
 0x181   :  { %805 = vst [vmem:[#allocation11 + $0x28] sm:$0xff] %v789_v34 }
 0x186   :  { %v726_v35 = vpop.f32.mrf.mxu3 }
 0x187   :  { %v799_v22 = vadd.f32 %v910_v12, %v726_v35 }
 0x188   :  { %v699_v44 = vpop.f32.mrf.mxu2 }
 0x189   :  { %v790_v46 = vadd.f32 %v910_v12, %v699_v44  ;;  %815 = vst [vmem:[#allocation11 + $0x78] sm:$0xff] %v799_v22 }
 0x18b   :  { %806 = vst [vmem:[#allocation11 + $0x30] sm:$0xff] %v790_v46 }
 0x190   :  { %v702_v48 = vpop.f32.mrf.mxu2 }
 0x191   :  { %v791_v49 = vadd.f32 %v910_v12, %v702_v48 }
 0x193   :  { %807 = vst [vmem:[#allocation11 + $0x38] sm:$0xff] %v791_v49 }
 0x198   :  { %v705_v51 = vpop.f32.mrf.mxu2 }
 0x199   :  { %v792_v52 = vadd.f32 %v910_v12, %v705_v51 }
 0x19b   :  { %808 = vst [vmem:[#allocation11 + $0x40] sm:$0xff] %v792_v52 }
 0x1a0   :  { %v708_v53 = vpop.f32.mrf.mxu2 }
 0x1a1   :  { %v793_v55 = vadd.f32 %v910_v12, %v708_v53 }
 0x1a3   :  { %809 = vst [vmem:[#allocation11 + $0x48] sm:$0xff] %v793_v55 }
 0x1a8   :  { %v711_v43 = vpop.f32.mrf.mxu2 }
 0x1a9   :  { %v794_v56 = vadd.f32 %v910_v12, %v711_v43 }
 0x1ab   :  { %810 = vst [vmem:[#allocation11 + $0x50] sm:$0xff] %v794_v56 }
 0x1b0   :  { %v714_v38 = vpop.f32.mrf.mxu2 }
 0x1b1   :  { %v795_v32 = vadd.f32 %v910_v12, %v714_v38 }
 0x1b3   :  { %811 = vst [vmem:[#allocation11 + $0x58] sm:$0xff] %v795_v32 }
 0x1b4   :  { %828 = dma.vmem_to_hbm [thread:$0]  %s821_s23, 2048, %s823_s26, [#allocation5], %s1104_s9, %s1104_s9, %s1105_s10  }
 0x1b5   :  { %1101 = dma.done.wait [#allocation5], 2048  }
 0x1b6   :  { %1102 = vsyncadd [#allocation5], 4294965248 }
 0x1b7   :  { %833 = vsyncpa [#allocation4], 1 }
 0x1b8   :  { %834 = vsyncpa [#allocation7], 1 }
 0x1b9   :  { %835 = vsyncpa [#allocation10], 1 }
 0x1ba   :  { %836 = vsyncpa [#allocation5], 1 }

</bundles_post_ra>
